<compile_context>
chip_gen: v7x
topology: tpu7x:2x2x1
jax: 0.10.0
libtpu: 0.0.40
codegen_flags: <defaults>
</compile_context>

<pallas_src>
import jax
import jax.numpy as jnp
from jax.experimental import pallas as pl
from jax.experimental.pallas import tpu as pltpu

STATE_DIM = 24
ACTION_DIM = 4
IN_DIM = STATE_DIM + ACTION_DIM   # 28
H1 = 400
H2 = 300
H1P = 512                         # 400 padded to a lane multiple
H2P = 384                         # 300 padded to a lane multiple
NUM_HEADS = 2


def _critic_kernel(s_ref, a_ref,
                   w1s_ref, w1a_ref, b1_ref,
                   w2_ref, b2_ref,
                   w3_ref, b3_ref,
                   q1_ref, q2_ref):
    """Fused twin-Q forward on one batch tile.

    Shapes (per batch tile Bt):
      s (Bt,24) f32   a (Bt,4) f32
      w1s (24,1024) bf16   w1a (4,1024) bf16   b1 (1,1024) f32
      w2  (2,512,384) bf16                     b2 (2,1,384) f32
      w3  (2,1,384) f32                        b3 (2,1) f32
      q1,q2 (Bt,1) f32
    """
    sb = s_ref[...].astype(jnp.bfloat16)
    ab = a_ref[...].astype(jnp.bfloat16)

    # Layer 1: concat(state, action) folded into two partial matmuls; both heads
    # merged along the output dim. bf16 operands, f32 accumulation.
    # (The K=4 action pass is mostly MXU fill; it could become 4 VPU FMAs if the
    #  MXU ever turns out to be the binding slot.)
    h = jnp.dot(sb, w1s_ref[...], preferred_element_type=jnp.float32)
    h = h + jnp.dot(ab, w1a_ref[...], preferred_element_type=jnp.float32)
    h = jnp.maximum(h + b1_ref[...], 0.0)                 # (Bt, 1024) f32
    hb = h.astype(jnp.bfloat16)

    def head(idx, lo):
        # Layer 2 (512 -> 384), per head via a lane-aligned slice of hb.
        g = jnp.dot(hb[:, lo:lo + H1P], w2_ref[idx],
                    preferred_element_type=jnp.float32)
        g = jnp.maximum(g + b2_ref[idx], 0.0)              # (Bt, 384) f32
        # Layer 3 (384 -> 1): VPU multiply + lane reduction (no N=1 MXU pass).
        r = jnp.sum(g * w3_ref[idx], axis=-1, keepdims=True)
        return r + b3_ref[idx:idx + 1, :]                  # (Bt, 1) f32

    q1_ref[...] = head(0, 0).astype(q1_ref.dtype)
    q2_ref[...] = head(1, H1P).astype(q2_ref.dtype)


def _pick_batch_block(batch, requested):
    """Batch tile: big (amortize per-step overhead) but >=2 grid steps (v7x)."""
    if batch < 16:
        return None                         # tiny batch: single whole-VMEM block
    bb = min(requested, batch // 2)         # always >= 2 grid iterations
    return max(8, (bb // 8) * 8)            # sublane multiple


def critic_forward(state, action, params, *, batch_block=512):
    """state: (B,24) f32, action: (B,4) f32 -> (q1, q2), each (B,1) f32."""
    B = state.shape[0]
    weights = (params["w1s"], params["w1a"], params["b1"],
               params["w2"], params["b2"], params["w3"], params["b3"])

    flops = 2 * B * (IN_DIM * NUM_HEADS * H1P
                     + NUM_HEADS * H1P * H2P + NUM_HEADS * H2P)
    bytes_accessed = (sum(int(x.size) * x.dtype.itemsize for x in weights)
                      + (state.size + action.size) * 4 + NUM_HEADS * B * 4)
    cost = pl.CostEstimate(flops=flops, transcendentals=0,
                           bytes_accessed=bytes_accessed)

    bb = _pick_batch_block(B, batch_block)

    if bb is None:
        # Tiny batch: every operand fits as a single whole-array VMEM block.
        out_shape = (jax.ShapeDtypeStruct((B, 1), jnp.float32),
                     jax.ShapeDtypeStruct((B, 1), jnp.float32))
        q1, q2 = pl.pallas_call(
            _critic_kernel, out_shape=out_shape, cost_estimate=cost,
        )(state, action, *weights)
        return q1, q2

    # Batch-tiled path: zero-pad the batch to a tile multiple (ragged B keeps the
    # fast path), keep the stacked bf16 weights VMEM-resident via constant index
    # maps, and mark the batch axis "parallel" (megacore / v7x dual-TC sharding).
    n_tiles = pl.cdiv(B, bb)
    Bp = n_tiles * bb
    if Bp != B:
        state = jnp.pad(state, ((0, Bp - B), (0, 0)))
        action = jnp.pad(action, ((0, Bp - B), (0, 0)))

    def const_spec(x):
        zeros = (0,) * x.ndim
        return pl.BlockSpec(x.shape, lambda i, z=zeros: z)

    in_specs = [pl.BlockSpec((bb, STATE_DIM), lambda i: (i, 0)),
                pl.BlockSpec((bb, ACTION_DIM), lambda i: (i, 0))]
    in_specs += [const_spec(w) for w in weights]
    out_specs = (pl.BlockSpec((bb, 1), lambda i: (i, 0)),
                 pl.BlockSpec((bb, 1), lambda i: (i, 0)))
    out_shape = (jax.ShapeDtypeStruct((Bp, 1), jnp.float32),
                 jax.ShapeDtypeStruct((Bp, 1), jnp.float32))

    q1, q2 = pl.pallas_call(
        _critic_kernel,
        out_shape=out_shape,
        grid=(n_tiles,),
        in_specs=in_specs,
        out_specs=out_specs,
        compiler_params=pltpu.CompilerParams(
            dimension_semantics=("parallel",)),
        cost_estimate=cost,
    )(state, action, *weights)
    return q1[:B], q2[:B]


def init_params(key):
    """Per-head raw params mimicking nn.Linear's U(-1/sqrt(fan_in)) init.
    Weights stored as (in_features, out_features)."""
    def linear(k, fan_in, fan_out):
        kw, kb = jax.random.split(k)
        bound = float(fan_in) ** -0.5
        w = jax.random.uniform(kw, (fan_in, fan_out), jnp.float32, -bound, bound)
        b = jax.random.uniform(kb, (fan_out,), jnp.float32, -bound, bound)
        return w, b

    keys = jax.random.split(key, 6)
    heads = []
    for h in range(NUM_HEADS):
        w1, b1 = linear(keys[3 * h + 0], IN_DIM, H1)
        w2, b2 = linear(keys[3 * h + 1], H1, H2)
        w3, b3 = linear(keys[3 * h + 2], H2, 1)
        heads.append(dict(w1=w1, b1=b1, w2=w2, b2=b2, w3=w3, b3=b3))
    return heads


def pack_params(heads):
    """Zero-pad hidden dims to lane multiples (exact under ReLU: padded biases
    are 0), split the layer-1 weight into state/action parts with the two heads
    merged along the output dim, and stack layers 2/3 per head. Matmul weights
    go to bf16 (f32 accumulation in-kernel); biases and w3 stay f32."""
    def pad(x, shape):
        return jnp.pad(x, [(0, t - s) for s, t in zip(x.shape, shape)])

    w1s = jnp.concatenate(
        [pad(h["w1"][:STATE_DIM], (STATE_DIM, H1P)) for h in heads], axis=1)
    w1a = jnp.concatenate(
        [pad(h["w1"][STATE_DIM:], (ACTION_DIM, H1P)) for h in heads], axis=1)
    b1 = jnp.concatenate([pad(h["b1"], (H1P,)) for h in heads])[None, :]
    w2 = jnp.stack([pad(h["w2"], (H1P, H2P)) for h in heads])
    b2 = jnp.stack([pad(h["b2"][None, :], (1, H2P)) for h in heads])
    w3 = jnp.stack([pad(h["w3"][:, 0][None, :], (1, H2P)) for h in heads])
    b3 = jnp.stack([h["b3"] for h in heads])                       # (2, 1)
    return dict(w1s=w1s.astype(jnp.bfloat16),
                w1a=w1a.astype(jnp.bfloat16),
                b1=b1,
                w2=w2.astype(jnp.bfloat16),
                b2=b2,
                w3=w3,
                b3=b3)


def _reference_forward(state, action, heads):
    sa = jnp.concatenate([state, action], axis=1)
    outs = []
    for h in heads:
        x = jnp.maximum(sa @ h["w1"] + h["b1"], 0.0)
        x = jnp.maximum(x @ h["w2"] + h["b2"], 0.0)
        outs.append(x @ h["w3"] + h["b3"])
    return outs[0], outs[1]


if __name__ == "__main__":
    key = jax.random.PRNGKey(0)
    kp, ks, ka = jax.random.split(key, 3)

    heads = init_params(kp)
    packed = pack_params(heads)

    # bf16 matmul operands (f32 accumulation) -> relaxed tolerance vs f32 reference.
    ATOL = RTOL = 2e-2

    # Small batch -> single whole-VMEM-block path.
    B = 8
    state = jax.random.normal(ks, (B, STATE_DIM), jnp.float32)
    action = jax.random.normal(ka, (B, ACTION_DIM), jnp.float32)
    q1, q2 = critic_forward(state, action, packed)
    q1 = jax.block_until_ready(q1)
    q2 = jax.block_until_ready(q2)

    r1, r2 = _reference_forward(state, action, heads)
    assert q1.shape == (B, 1) and q2.shape == (B, 1)
    assert jnp.allclose(q1, r1, atol=ATOL, rtol=RTOL)
    assert jnp.allclose(q2, r2, atol=ATOL, rtol=RTOL)

    # Larger, ragged batch -> batch-tiled ("parallel" grid, >=2 steps) path with
    # VMEM-resident weights and zero-padded last tile.
    Bb = 200
    ks2, ka2 = jax.random.split(jax.random.PRNGKey(1))
    state_b = jax.random.normal(ks2, (Bb, STATE_DIM), jnp.float32)
    action_b = jax.random.normal(ka2, (Bb, ACTION_DIM), jnp.float32)
    q1b, q2b = critic_forward(state_b, action_b, packed)
    q1b = jax.block_until_ready(q1b)
    q2b = jax.block_until_ready(q2b)
    r1b, r2b = _reference_forward(state_b, action_b, heads)
    assert q1b.shape == (Bb, 1) and q2b.shape == (Bb, 1)
    assert jnp.allclose(q1b, r1b, atol=ATOL, rtol=RTOL)
    assert jnp.allclose(q2b, r2b, atol=ATOL, rtol=RTOL)

    print("KERNEL_OK")
</pallas_src>

<mosaic_0001>
module attributes {stable_mosaic.version = 11 : i64} {
  func.func @_critic_kernel(%arg0: memref<8x24xf32, #tpu.memory_space<vmem>>, %arg1: memref<8x4xf32, #tpu.memory_space<vmem>>, %arg2: memref<24x1024xbf16, #tpu.memory_space<vmem>>, %arg3: memref<4x1024xbf16, #tpu.memory_space<vmem>>, %arg4: memref<1x1024xf32, #tpu.memory_space<vmem>>, %arg5: memref<2x512x384xbf16, #tpu.memory_space<vmem>>, %arg6: memref<2x1x384xf32, #tpu.memory_space<vmem>>, %arg7: memref<2x1x384xf32, #tpu.memory_space<vmem>>, %arg8: memref<2x1xf32, #tpu.memory_space<vmem>>, %arg9: memref<8x1xf32, #tpu.memory_space<vmem>>, %arg10: memref<8x1xf32, #tpu.memory_space<vmem>>) attributes {dimension_semantics = [], scalar_prefetch = 0 : i64, scratch_operands = 0 : i64, tpu.core_type = #tpu.core_type<tc>} {
    %c0 = arith.constant 0 : index
    %c0_0 = arith.constant 0 : index
    %0 = vector.load %arg0[%c0, %c0_0] : memref<8x24xf32, #tpu.memory_space<vmem>>, vector<8x24xf32>
    %1 = arith.truncf %0 : vector<8x24xf32> to vector<8x24xbf16>
    %c0_1 = arith.constant 0 : index
    %c0_2 = arith.constant 0 : index
    %2 = vector.load %arg1[%c0_1, %c0_2] : memref<8x4xf32, #tpu.memory_space<vmem>>, vector<8x4xf32>
    %3 = arith.truncf %2 : vector<8x4xf32> to vector<8x4xbf16>
    %c0_3 = arith.constant 0 : index
    %c0_4 = arith.constant 0 : index
    %4 = vector.load %arg2[%c0_3, %c0_4] : memref<24x1024xbf16, #tpu.memory_space<vmem>>, vector<24x1024xbf16>
    %cst = arith.constant dense<0.000000e+00> : vector<8x1024xf32>
    %5 = tpu.matmul %1, %4, %cst {dimension_numbers = #tpu.dot_dimension_numbers<[1], [0], [0], [1], [0, 0, 1, 1], [], []>} : vector<8x24xbf16>, vector<24x1024xbf16>, vector<8x1024xf32> -> vector<8x1024xf32>
    %c0_5 = arith.constant 0 : index
    %c0_6 = arith.constant 0 : index
    %6 = vector.load %arg3[%c0_5, %c0_6] : memref<4x1024xbf16, #tpu.memory_space<vmem>>, vector<4x1024xbf16>
    %cst_7 = arith.constant dense<0.000000e+00> : vector<8x1024xf32>
    %7 = tpu.matmul %3, %6, %cst_7 {dimension_numbers = #tpu.dot_dimension_numbers<[1], [0], [0], [1], [0, 0, 1, 1], [], []>} : vector<8x4xbf16>, vector<4x1024xbf16>, vector<8x1024xf32> -> vector<8x1024xf32>
    %8 = arith.addf %5, %7 : vector<8x1024xf32>
    %c0_8 = arith.constant 0 : index
    %c0_9 = arith.constant 0 : index
    %9 = vector.load %arg4[%c0_8, %c0_9] : memref<1x1024xf32, #tpu.memory_space<vmem>>, vector<1x1024xf32>
    %10 = vector.broadcast %9 : vector<1x1024xf32> to vector<8x1024xf32>
    %11 = arith.addf %8, %10 : vector<8x1024xf32>
    %cst_10 = arith.constant 0.000000e+00 : f32
    %12 = vector.broadcast %cst_10 : f32 to vector<8x1024xf32>
    %13 = arith.maximumf %11, %12 : vector<8x1024xf32>
    %14 = arith.truncf %13 : vector<8x1024xf32> to vector<8x1024xbf16>
    %15 = vector.extract_strided_slice %14 {offsets = [0, 0], sizes = [8, 512], strides = [1, 1]} : vector<8x1024xbf16> to vector<8x512xbf16>
    %c0_11 = arith.constant 0 : index
    %c0_12 = arith.constant 0 : index
    %c0_13 = arith.constant 0 : index
    %16 = vector.load %arg5[%c0_11, %c0_12, %c0_13] : memref<2x512x384xbf16, #tpu.memory_space<vmem>>, vector<1x512x384xbf16>
    %17 = vector.shape_cast %16 : vector<1x512x384xbf16> to vector<512x384xbf16>
    %cst_14 = arith.constant dense<0.000000e+00> : vector<8x384xf32>
    %18 = tpu.matmul %15, %17, %cst_14 {dimension_numbers = #tpu.dot_dimension_numbers<[1], [0], [0], [1], [0, 0, 1, 1], [], []>} : vector<8x512xbf16>, vector<512x384xbf16>, vector<8x384xf32> -> vector<8x384xf32>
    %c0_15 = arith.constant 0 : index
    %c0_16 = arith.constant 0 : index
    %c0_17 = arith.constant 0 : index
    %19 = vector.load %arg6[%c0_15, %c0_16, %c0_17] : memref<2x1x384xf32, #tpu.memory_space<vmem>>, vector<1x1x384xf32>
    %20 = vector.shape_cast %19 : vector<1x1x384xf32> to vector<1x384xf32>
    %21 = vector.broadcast %20 : vector<1x384xf32> to vector<8x384xf32>
    %22 = arith.addf %18, %21 : vector<8x384xf32>
    %cst_18 = arith.constant 0.000000e+00 : f32
    %23 = vector.broadcast %cst_18 : f32 to vector<8x384xf32>
    %24 = arith.maximumf %22, %23 : vector<8x384xf32>
    %c0_19 = arith.constant 0 : index
    %c0_20 = arith.constant 0 : index
    %c0_21 = arith.constant 0 : index
    %25 = vector.load %arg7[%c0_19, %c0_20, %c0_21] : memref<2x1x384xf32, #tpu.memory_space<vmem>>, vector<1x1x384xf32>
    %26 = vector.shape_cast %25 : vector<1x1x384xf32> to vector<1x384xf32>
    %27 = vector.broadcast %26 : vector<1x384xf32> to vector<8x384xf32>
    %28 = arith.mulf %24, %27 : vector<8x384xf32>
    %cst_22 = arith.constant dense<0.000000e+00> : vector<8xf32>
    %29 = vector.multi_reduction <add>, %28, %cst_22 [1] : vector<8x384xf32> to vector<8xf32>
    %30 = vector.shape_cast %29 : vector<8xf32> to vector<8x1xf32>
    %c0_23 = arith.constant 0 : index
    %c0_24 = arith.constant 0 : index
    %31 = vector.load %arg8[%c0_23, %c0_24] : memref<2x1xf32, #tpu.memory_space<vmem>>, vector<1x1xf32>
    %32 = vector.broadcast %31 : vector<1x1xf32> to vector<8x1xf32>
    %33 = arith.addf %30, %32 : vector<8x1xf32>
    %c0_25 = arith.constant 0 : index
    %c0_26 = arith.constant 0 : index
    %34 = vector.load %arg9[%c0_25, %c0_26] : memref<8x1xf32, #tpu.memory_space<vmem>>, vector<8x1xf32>
    tpu.vector_store %arg9[%c0_25, %c0_26], %33 {strides = array<i32>} : memref<8x1xf32, #tpu.memory_space<vmem>>, vector<8x1xf32>,
    %35 = vector.extract_strided_slice %14 {offsets = [0, 512], sizes = [8, 512], strides = [1, 1]} : vector<8x1024xbf16> to vector<8x512xbf16>
    %c1 = arith.constant 1 : index
    %c0_27 = arith.constant 0 : index
    %c0_28 = arith.constant 0 : index
    %36 = vector.load %arg5[%c1, %c0_27, %c0_28] : memref<2x512x384xbf16, #tpu.memory_space<vmem>>, vector<1x512x384xbf16>
    %37 = vector.shape_cast %36 : vector<1x512x384xbf16> to vector<512x384xbf16>
    %cst_29 = arith.constant dense<0.000000e+00> : vector<8x384xf32>
    %38 = tpu.matmul %35, %37, %cst_29 {dimension_numbers = #tpu.dot_dimension_numbers<[1], [0], [0], [1], [0, 0, 1, 1], [], []>} : vector<8x512xbf16>, vector<512x384xbf16>, vector<8x384xf32> -> vector<8x384xf32>
    %c1_30 = arith.constant 1 : index
    %c0_31 = arith.constant 0 : index
    %c0_32 = arith.constant 0 : index
    %39 = vector.load %arg6[%c1_30, %c0_31, %c0_32] : memref<2x1x384xf32, #tpu.memory_space<vmem>>, vector<1x1x384xf32>
    %40 = vector.shape_cast %39 : vector<1x1x384xf32> to vector<1x384xf32>
    %41 = vector.broadcast %40 : vector<1x384xf32> to vector<8x384xf32>
    %42 = arith.addf %38, %41 : vector<8x384xf32>
    %cst_33 = arith.constant 0.000000e+00 : f32
    %43 = vector.broadcast %cst_33 : f32 to vector<8x384xf32>
    %44 = arith.maximumf %42, %43 : vector<8x384xf32>
    %c1_34 = arith.constant 1 : index
    %c0_35 = arith.constant 0 : index
    %c0_36 = arith.constant 0 : index
    %45 = vector.load %arg7[%c1_34, %c0_35, %c0_36] : memref<2x1x384xf32, #tpu.memory_space<vmem>>, vector<1x1x384xf32>
    %46 = vector.shape_cast %45 : vector<1x1x384xf32> to vector<1x384xf32>
    %47 = vector.broadcast %46 : vector<1x384xf32> to vector<8x384xf32>
    %48 = arith.mulf %44, %47 : vector<8x384xf32>
    %cst_37 = arith.constant dense<0.000000e+00> : vector<8xf32>
    %49 = vector.multi_reduction <add>, %48, %cst_37 [1] : vector<8x384xf32> to vector<8xf32>
    %50 = vector.shape_cast %49 : vector<8xf32> to vector<8x1xf32>
    %c1_38 = arith.constant 1 : index
    %c0_39 = arith.constant 0 : index
    %51 = vector.load %arg8[%c1_38, %c0_39] : memref<2x1xf32, #tpu.memory_space<vmem>>, vector<1x1xf32>
    %52 = vector.broadcast %51 : vector<1x1xf32> to vector<8x1xf32>
    %53 = arith.addf %50, %52 : vector<8x1xf32>
    %c0_40 = arith.constant 0 : index
    %c0_41 = arith.constant 0 : index
    %54 = vector.load %arg10[%c0_40, %c0_41] : memref<8x1xf32, #tpu.memory_space<vmem>>, vector<8x1xf32>
    tpu.vector_store %arg10[%c0_40, %c0_41], %53 {strides = array<i32>} : memref<8x1xf32, #tpu.memory_space<vmem>>, vector<8x1xf32>,
    return
  }
}

</mosaic_0001>

<bundles_post_ra>
// kernel: tpu_custom_call.1
= control target key start
LH: loop header
LB: loop body
LE: loop exit
PB: predicated region body
PF: predicated region fallthrough
CT: control target
= control target key end

     0   :  { %16 = vsyncpa [#allocation3], 0  ;;  %s3273_s0 = inlined_call_operand.vmem [shape: f32[8,24], index: 0, kind: input, shape index: {}]   ;;  %s3274_s1 = inlined_call_operand.vmem [shape: f32[8,4], index: 1, kind: input, shape index: {}]   ;;  %s3275_s2 = inlined_call_operand.hbm [shape: bf16[24,1024], index: 2, kind: input, shape index: {}]   ;;  %s3276_s3 = inlined_call_operand.vmem [shape: bf16[4,1024], index: 3, kind: input, shape index: {}]   ;;  %s3277_s4 = inlined_call_operand.hbm [shape: f32[1,1024], index: 4, kind: input, shape index: {}]   ;;  %s3278_s5 = inlined_call_operand.hbm [shape: bf16[2,512,384], index: 5, kind: input, shape index: {}]   ;;  %s3279_s6 = inlined_call_operand.vmem [shape: f32[2,1,384], index: 6, kind: input, shape index: {}]   ;;  %s3280_s7 = inlined_call_operand.vmem [shape: f32[2,1,384], index: 7, kind: input, shape index: {}]   ;;  %s3281_s8 = inlined_call_operand.vmem [shape: f32[2,1], index: 8, kind: input, shape index: {}]   ;;  %s3282_s9 = inlined_call_operand.vmem [shape: f32[8,1], index: 9, kind: output, shape index: {0}]   ;;  %s3283_s10 = inlined_call_operand.vmem [shape: f32[8,1], index: 10, kind: output, shape index: {1}]  }
   0x1   :  { %17 = vsyncpa [#allocation5], 0  ;;  %s3033_s13 = smov [#allocation4]   ;;  %s3034_s15 = smov [#allocation2]  }
   0x2   :  { %s42_s14 = sshll.u32 %s3033_s13, 4  ;;  %s27_s16 = sshll.u32 %s3034_s15, 4  ;;  %s43_s14 = int_to_ptr.vmem [resolvable:$true] %s42_s14  ;;  %s3097_s16 = int_to_ptr.vmem [resolvable:$true] %s27_s16 }
   0x3   :  { %s2963_s19 = scalar_lea.hbm %s3277_s4, 128 }
   0x4   :  { %p2964_p0 = scmp.ne.s32.totalorder %s3277_s4, %s2963_s19  ;;  %p2967_p1 = scmp.lt.u32.totalorder %s2963_s19, %s3277_s4 }
   0x6   :  { %p2969_p2 = pnand %p2967_p1, %p2964_p0 }
   0x8   :  { %2972 = shalt.err (!%p2969_p2)
}
   0x9   :  { %s2973_s24 = scalar_lea.vmem %s43_s14, 128  ;;  %p2978_p4 = scmp.lt.s32.totalorder %s43_s14, %s43_s14 }
   0xa   :  { %p2974_p3 = scmp.ne.s32.totalorder %s43_s14, %s2973_s24  ;;  %p2979_p5 = scmp.lt.s32.totalorder %s2973_s24, %s2973_s24 }
   0xc   :  { %p2980_p6 = por %p2979_p5, %p2978_p4 }
   0xe   :  { %p2981_p7 = pnand %p2980_p6, %p2974_p3 }
  0x10   :  { %2984 = shalt.err (!%p2981_p7)
}
  0x11   :  { %45 = dma.hbm_to_vmem [thread:$0]  %s3277_s4, 128, %s43_s14, [#allocation5]  }
  0x12   :  { %s2985_s29 = scalar_lea.hbm %s3275_s2, 1536 }
  0x13   :  { %p2986_p8 = scmp.ne.s32.totalorder %s3275_s2, %s2985_s29  ;;  %p2989_p9 = scmp.lt.u32.totalorder %s2985_s29, %s3275_s2 }
  0x15   :  { %p2991_p10 = pnand %p2989_p9, %p2986_p8 }
  0x17   :  { %2994 = shalt.err (!%p2991_p10)
}
  0x18   :  { %s2995_s15 = scalar_lea.vmem %s3097_s16, 1536  ;;  %p3000_p12 = scmp.lt.s32.totalorder %s3097_s16, %s3097_s16 }
  0x19   :  { %p2996_p11 = scmp.ne.s32.totalorder %s3097_s16, %s2995_s15  ;;  %p3001_p13 = scmp.lt.s32.totalorder %s2995_s15, %s2995_s15 }
  0x1b   :  { %p3002_p0 = por %p3001_p13, %p3000_p12 }
  0x1d   :  { %p3003_p1 = pnand %p3002_p0, %p2996_p11 }
  0x1f   :  { %3006 = shalt.err (!%p3003_p1)
}
  0x20   :  { %s3035_s4 = smov 512   ;;  %s3036_s14 = smov 32  }
  0x21   :  { %33 = dma.hbm_to_vmem [thread:$0]  %s3275_s2, 1536, %s3097_s16, [#allocation3], %s3035_s4, %s3035_s4, %s3036_s14  }
  0x22   :  { %s3037_s19 = smov [#allocation6]   ;;  %s3007_s23 = scalar_lea.hbm %s3278_s5, 24576 }
  0x23   :  { %s51_s20 = sshll.u32 %s3037_s19, 4  ;;  %p3008_p2 = scmp.ne.s32.totalorder %s3278_s5, %s3007_s23  ;;  %s52_s20 = int_to_ptr.vmem [resolvable:$true] %s51_s20 }
  0x24   :  { %p3011_p3 = scmp.lt.u32.totalorder %s3007_s23, %s3278_s5 }
  0x26   :  { %p3013_p4 = pnand %p3011_p3, %p3008_p2 }
  0x28   :  { %3016 = shalt.err (!%p3013_p4)
}
  0x29   :  { %s3017_s28 = scalar_lea.vmem %s52_s20, 24576  ;;  %p3022_p6 = scmp.lt.s32.totalorder %s52_s20, %s52_s20 }
  0x2a   :  { %p3018_p5 = scmp.ne.s32.totalorder %s52_s20, %s3017_s28  ;;  %p3023_p7 = scmp.lt.s32.totalorder %s3017_s28, %s3017_s28 }
  0x2c   :  { %p3024_p8 = por %p3023_p7, %p3022_p6 }
  0x2e   :  { %p3025_p9 = pnand %p3024_p8, %p3018_p5 }
  0x30   :  { %3028 = shalt.err (!%p3025_p9)
}
  0x31   :  { %s3038_s2 = smov 192   ;;  %s3039_s16 = smov 12  }
  0x32   :  { %57 = dma.hbm_to_vmem [thread:$0]  %s3278_s5, 24576, %s52_s20, [#allocation5], %s3038_s2, %s3038_s2, %s3039_s16  }
  0x33   :  { %3029 = dma.done.wait [#allocation3], 1536  }
  0x34   :  { %3030 = vsyncadd [#allocation3], 4294965760 }
  0x35   :  { %3031 = dma.done.wait [#allocation5], 24704  }
  0x36   :  { %3032 = vsyncadd [#allocation5], 4294942592  ;;  %v98_v0 = vlaneseq  ;;  %v3040_v1 = vmov 1983009808   ;;  %v3041_v3 = vmov 0   ;;  %v90_v7 = vld [vmem:[%s3276_s3] sm:$0xff] }
  0x37   :  { %v96_v2 = vunpack.c.l.s4 %v3040_v1  ;;  %189 = vmatprep.mubr.bf16.mxu0 %v3041_v3  ;;  %230 = vmatprep.mubr.bf16.mxu1 %v3041_v3  ;;  %vm132_vm0 = vcmask 1041408   ;;  %v91_v8 = vld [vmem:[%s3276_s3 + $0x8] sm:$0xff]  ;;  %v94_v11 = vcombine.high %v90_v7, %v90_v7  ;;  %v76_v12 = vld [vmem:[%s3274_s1] sm:$0xff]  ;;  %vm128_vm1 = vcmask 31744   ;;  %v80_v35 = vld [vmem:[#allocation2 + $0x10] sm:$0xff] }
  0x38   :  { %v3142_v4 = vshrl.u32 %v98_v0, 7  ;;  %v78_v16 = vld [vmem:[#allocation2] sm:$0xff]  ;;  %v77_v19 = vpack.c.bf16 %v76_v12, %v76_v12  ;;  %v111_v20 = vcombine.high %v91_v8, %v91_v8  ;;  %v79_v26 = vld [vmem:[#allocation2 + $0x8] sm:$0xff]  ;;  %vm385_vm2 = vcmask 1043456   ;;  %v84_v37 = vld [vmem:[#allocation2 + $0x30] sm:$0xff] }
  0x39   :  { %v97_v5 = vunpack.c.0.s8 %v96_v2  ;;  %v82_v17 = vld [vmem:[#allocation2 + $0x20] sm:$0xff]  ;;  %v83_v27 = vld [vmem:[#allocation2 + $0x28] sm:$0xff]  ;;  %v2373_v43 = vcombine.high %v80_v35, %v84_v37  ;;  %v88_v44 = vld [vmem:[#allocation2 + $0x50] sm:$0xff]  ;;  %vm381_vm3 = vcmask 195584   ;;  %v2372_v48 = vcombine.low %v80_v35, %v84_v37 }
  0x3a   :  { %v2369_v24 = vcombine.high %v78_v16, %v82_v17  ;;  %v2371_v30 = vcombine.high %v79_v26, %v83_v27  ;;  %v86_v31 = vld [vmem:[#allocation2 + $0x40] sm:$0xff]  ;;  %v2368_v32 = vcombine.low %v78_v16, %v82_v17  ;;  %v87_v36 = vld [vmem:[#allocation2 + $0x48] sm:$0xff]  ;;  %v2370_v38 = vcombine.low %v79_v26, %v83_v27  ;;  %v81_v45 = vld [vmem:[#allocation2 + $0x18] sm:$0xff] }
  0x3b   :  { %v100_v6 = vsub.s32 %v97_v5, %v3142_v4  ;;  %v2377_v33 = vcombine.high %v86_v31, %v86_v31  ;;  %v2376_v34 = vcombine.low %v86_v31, %v86_v31  ;;  %v74_v39 = vld [vmem:[%s3273_s0] sm:$0xff]  ;;  %v2379_v40 = vcombine.high %v87_v36, %v87_v36  ;;  %v85_v46 = vld [vmem:[#allocation2 + $0x38] sm:$0xff]  ;;  %v2707_v59 = vld [vmem:[#allocation6] ss:$12 sps:$4 sm:$0xff]  }
  0x3c   :  { %v2378_v41 = vcombine.low %v87_v36, %v87_v36  ;;  %v75_v47 = vpack.c.bf16 %v74_v39, %v74_v39  ;;  %v89_v50 = vld [vmem:[#allocation2 + $0x58] sm:$0xff]  ;;  %v2381_v51 = vcombine.high %v88_v44, %v88_v44  ;;  %v2380_v52 = vcombine.low %v88_v44, %v88_v44  ;;  %v2712_v61 = vld [vmem:[#allocation6 + $0x1c] ss:$12 sps:$4 sm:$0xff]   ;;  %v2710_v0 = vld [vmem:[#allocation6 + $0x18] ss:$12 sps:$4 sm:$0xff]  }
  0x3d   :  { %v101_v9 = vrot.slane %v90_v7, %v100_v6  ;;  %v118_v10 = vrot.slane %v91_v8, %v100_v6  ;;  %v108_v18 = vrot.slane %v94_v11, %v100_v6  ;;  %v125_v25 = vrot.slane %v111_v20, %v100_v6  ;;  %v2709_v55 = vld [vmem:[#allocation6 + $0x4] ss:$12 sps:$4 sm:$0xff]   ;;  %v2734_v60 = vld [vmem:[#allocation6 + $0xc8] ss:$12 sps:$4 sm:$0xff]   ;;  %v2739_v1 = vld [vmem:[#allocation6 + $0xe0] ss:$12 sps:$4 sm:$0xff]  }
  0x3e   :  { %v387_v42 = vsel %vm385_vm2, %v2376_v34, 0  ;;  %v393_v49 = vsel %vm385_vm2, %v2378_v41, 0  ;;  %v2375_v53 = vcombine.high %v81_v45, %v85_v46  ;;  %v2374_v54 = vcombine.low %v81_v45, %v85_v46  ;;  %v2735_v63 = vld [vmem:[#allocation6 + $0x8] ss:$12 sps:$4 sm:$0xff]   ;;  %v2740_v5 = vld [vmem:[#allocation6 + $0x20] ss:$12 sps:$4 sm:$0xff]  }
  0x3f   :  { %v109_v13 = vcombine.high %v101_v9, %v101_v9  ;;  %v134_v14 = vsel %vm132_vm0, %v101_v9, 0  ;;  %v126_v15 = vcombine.high %v118_v10, %v118_v10  ;;  %v110_v21 = vcombine.high %v108_v18, %v108_v18  ;;  %v2715_v2 = vld [vmem:[#allocation6 + $0x34] ss:$12 sps:$4 sm:$0xff]   ;;  %v2718_v6 = vld [vmem:[#allocation6 + $0x4c] ss:$12 sps:$4 sm:$0xff]  }
  0x40   :  { %v140_v22 = vsel %vm132_vm0, %v108_v18, 0  ;;  %v146_v23 = vsel %vm132_vm0, %v118_v10, 0  ;;  %v127_v28 = vcombine.high %v125_v25, %v125_v25  ;;  %v152_v29 = vsel %vm132_vm0, %v125_v25, 0  ;;  %v2716_v7 = vld [vmem:[#allocation6 + $0x48] ss:$12 sps:$4 sm:$0xff]  }
  0x41   :  { %2360 = vmatprep.subr.msk.bf16.mxu0 %vm132_vm0, %v109_v13  ;;  %2362 = vmatprep.subr.msk.bf16.mxu1 %vm132_vm0, %v110_v21  ;;  %v2383_v56 = vcombine.high %v89_v50, %v89_v50  ;;  %v2382_v57 = vcombine.low %v89_v50, %v89_v50  ;;  %v399_v58 = vsel %vm385_vm2, %v2380_v52, 0  ;;  %v2721_v8 = vld [vmem:[#allocation6 + $0x64] ss:$12 sps:$4 sm:$0xff]   ;;  %v2719_v9 = vld [vmem:[#allocation6 + $0x60] ss:$12 sps:$4 sm:$0xff]   ;;  %vm1492_vm4 = vcmask 7168  }
  0x42   :  { %158 = vmatpush1.bf16.msra.mxu0 %v134_v14  ;;  %199 = vmatpush1.bf16.msra.mxu1 %v140_v22  ;;  %v2724_v10 = vld [vmem:[#allocation6 + $0x7c] ss:$12 sps:$4 sm:$0xff]   ;;  %v2722_v11 = vld [vmem:[#allocation6 + $0x78] ss:$12 sps:$4 sm:$0xff]   ;;  %v2727_v12 = vld [vmem:[#allocation6 + $0x94] ss:$12 sps:$4 sm:$0xff]  }
  0x43   :  { %2364 = vmatprep.subr.msk.bf16.mxu0 %vm132_vm0, %v126_v15  ;;  %2366 = vmatprep.subr.msk.bf16.mxu1 %vm132_vm0, %v127_v28  ;;  %v405_v62 = vsel %vm385_vm2, %v2382_v57, 0  ;;  %v2725_v13 = vld [vmem:[#allocation6 + $0x90] ss:$12 sps:$4 sm:$0xff]   ;;  %v2730_v14 = vld [vmem:[#allocation6 + $0xac] ss:$12 sps:$4 sm:$0xff]  }
  0x44   :  { %v2728_v15 = vld [vmem:[#allocation6 + $0xa8] ss:$12 sps:$4 sm:$0xff]   ;;  %v2733_v16 = vld [vmem:[#allocation6 + $0xc4] ss:$12 sps:$4 sm:$0xff]   ;;  %v2731_v17 = vld [vmem:[#allocation6 + $0xc0] ss:$12 sps:$4 sm:$0xff]  }
  0x45   :  { %2361 = vmatmul.mubr.msk.bf16.vlgmr.msra.gmra.mrb[0].mxu0 %vm128_vm1, %v77_v19  ;;  %2363 = vmatmul.mubr.msk.bf16.vlgmr.msra.gmra.mrb[0].mxu1 %vm128_vm1, %v77_v19  ;;  %v2738_v18 = vld [vmem:[#allocation6 + $0xdc] ss:$12 sps:$4 sm:$0xff]   ;;  %v2743_v20 = vld [vmem:[#allocation6 + $0xf4] ss:$12 sps:$4 sm:$0xff]   ;;  %v2744_v21 = vld [vmem:[#allocation6 + $0xf8] ss:$12 sps:$4 sm:$0xff]  }
  0x46   :  { %240 = vmatpush1.bf16.msra.mxu0 %v146_v23  ;;  %271 = vmatprep.mubr.bf16.mxu0 %v3041_v3  ;;  %v2741_v22 = vld [vmem:[#allocation6 + $0xf0] ss:$12 sps:$4 sm:$0xff]   ;;  %v2745_v23 = vld [vmem:[#allocation6 + $0x38] ss:$12 sps:$4 sm:$0xff]   ;;  %v2755_v31 = vld [vmem:[#allocation6 + $0x68] ss:$12 sps:$4 sm:$0xff]  }
  0x47   :  { %410 = vmatprep.subr.bf16.mxu0 %v2369_v24  ;;  %281 = vmatpush1.bf16.msra.mxu1 %v152_v29  ;;  %v2746_v24 = vld [vmem:[#allocation6 + $0x108] ss:$12 sps:$4 sm:$0xff]   ;;  %v2748_v25 = vld [vmem:[#allocation6 + $0x10c] ss:$12 sps:$4 sm:$0xff]   ;;  %v2749_v26 = vld [vmem:[#allocation6 + $0x110] ss:$12 sps:$4 sm:$0xff]  }
  0x48   :  { %312 = vmatprep.mubr.bf16.mxu1 %v3041_v3  ;;  %451 = vmatprep.subr.bf16.mxu1 %v2371_v30  ;;  %v2750_v27 = vld [vmem:[#allocation6 + $0x50] ss:$12 sps:$4 sm:$0xff]   ;;  %v2754_v29 = vld [vmem:[#allocation6 + $0x128] ss:$12 sps:$4 sm:$0xff]   ;;  %v2751_v30 = vld [vmem:[#allocation6 + $0x120] ss:$12 sps:$4 sm:$0xff]  }
  0x49   :  { %v2753_v28 = vld [vmem:[#allocation6 + $0x124] ss:$12 sps:$4 sm:$0xff]   ;;  %v2759_v34 = vld [vmem:[#allocation6 + $0x140] ss:$12 sps:$4 sm:$0xff]   ;;  %v2774_v45 = vld [vmem:[#allocation6 + $0x248] ss:$12 sps:$4 sm:$0xff]  }
  0x4a   :  { %v2760_v35 = vld [vmem:[#allocation6 + $0x80] ss:$12 sps:$4 sm:$0xff]   ;;  %v2764_v37 = vld [vmem:[#allocation6 + $0x158] ss:$12 sps:$4 sm:$0xff]   ;;  %v2769_v41 = vld [vmem:[#allocation6 + $0x170] ss:$12 sps:$4 sm:$0xff]  }
  0x4b   :  { %v2763_v36 = vld [vmem:[#allocation6 + $0x154] ss:$12 sps:$4 sm:$0xff]   ;;  %v2765_v39 = vld [vmem:[#allocation6 + $0x98] ss:$12 sps:$4 sm:$0xff]  }
  0x4c   :  { %v2773_v44 = vld [vmem:[#allocation6 + $0x184] ss:$12 sps:$4 sm:$0xff]  }
  0x4d   :  { %2365 = vmatmul.mubr.msk.bf16.vlgmr.msra.gmra.mrb[4].mxu0 %vm128_vm1, %v77_v19  ;;  %2367 = vmatmul.mubr.msk.bf16.vlgmr.msra.gmra.mrb[4].mxu1 %vm128_vm1, %v77_v19  ;;  %v2736_v19 = vld [vmem:[#allocation6 + $0xd8] ss:$12 sps:$4 sm:$0xff]  }
  0x4e   :  { %411 = vmatpush1.bf16.msra.mxu0 %v2368_v32  ;;  %442 = vmatprep.mubr.bf16.mxu0 %v3041_v3  ;;  %v2756_v32 = vld [vmem:[#allocation6 + $0x138] ss:$12 sps:$4 sm:$0xff]  }
  0x4f   :  { %2384 = vmatprep.subr.msk.bf16.mxu0 %vm385_vm2, %v2377_v33  ;;  %452 = vmatpush1.bf16.msra.mxu1 %v2370_v38  ;;  %v2758_v33 = vld [vmem:[#allocation6 + $0x13c] ss:$12 sps:$4 sm:$0xff]  }
  0x50   :  { %483 = vmatprep.mubr.bf16.mxu1 %v3041_v3  ;;  %2386 = vmatprep.subr.msk.bf16.mxu1 %vm385_vm2, %v2379_v40  ;;  %v2761_v38 = vld [vmem:[#allocation6 + $0x150] ss:$12 sps:$4 sm:$0xff]   ;;  %v2768_v40 = vld [vmem:[#allocation6 + $0x16c] ss:$12 sps:$4 sm:$0xff]  }
  0x52   :  { %413 = vmatpush1.bf16.msra.mxu0 %v387_v42  ;;  %v2766_v42 = vld [vmem:[#allocation6 + $0x168] ss:$12 sps:$4 sm:$0xff]  }
  0x53   :  { %492 = vmatprep.subr.bf16.mxu0 %v2373_v43  ;;  %454 = vmatpush1.bf16.msra.mxu1 %v393_v49  ;;  %v2770_v43 = vld [vmem:[#allocation6 + $0xb0] ss:$12 sps:$4 sm:$0xff]  }
  0x54   :  { %533 = vmatprep.subr.bf16.mxu1 %v2375_v53 }
  0x55   :  { %2385 = vmatmul.mubr.msk.bf16.vlgmr.msra.gmra.mrb[8].mxu0 %vm381_vm3, %v75_v47 }
  0x56   :  { %493 = vmatpush1.bf16.msra.mxu0 %v2372_v48  ;;  %524 = vmatprep.mubr.bf16.mxu0 %v3041_v3 }
  0x57   :  { %2388 = vmatprep.subr.msk.bf16.mxu0 %vm385_vm2, %v2381_v51  ;;  %2387 = vmatmul.mubr.msk.bf16.vlgmr.msra.gmra.mrb[8].mxu1 %vm381_vm3, %v75_v47 }
  0x58   :  { %534 = vmatpush1.bf16.msra.mxu1 %v2374_v54  ;;  %565 = vmatprep.mubr.bf16.mxu1 %v3041_v3  ;;  %v2713_v3 = vld [vmem:[#allocation6 + $0x30] ss:$12 sps:$4 sm:$0xff]  }
  0x59   :  { %2390 = vmatprep.subr.msk.bf16.mxu1 %vm385_vm2, %v2383_v56 }
  0x5a   :  { %495 = vmatpush1.bf16.msra.mxu0 %v399_v58  ;;  %v3188_v58 = vsub.s32 0, %v3142_v4 }
  0x5b   :  { %1297 = vmatprep.subr.bf16.mxu0 %v2709_v55 }
  0x5c   :  { %536 = vmatpush1.bf16.msra.mxu1 %v405_v62 }
  0x5d   :  { %2389 = vmatmul.mubr.msk.bf16.vlgmr.msra.gmra.mrb[12].mxu0 %vm381_vm3, %v75_v47  ;;  %2588 = vmatprep.subr.bf16.mxu1 %v2734_v60  ;;  %v3190_v60 = vld [vmem:[#allocation4] sm:$0xff] }
  0x5e   :  { %1298 = vmatpush1.bf16.msra.mxu0 %v2707_v59 }
  0x5f   :  { %1299 = vmatprep.subr.bf16.mxu0 %v2712_v61  ;;  %2391 = vmatmul.mubr.msk.bf16.vlgmr.msra.gmra.mrb[12].mxu1 %vm381_vm3, %v75_v47  ;;  %v3193_v61 = vsub.s32 1, %v3142_v4 }
  0x60   :  { %2589 = vmatpush3.bf16.msra.mxu1 %v2735_v63 }
  0x61   :  { %2590 = vmatprep.subr.bf16.mxu1 %v2739_v1  ;;  %v579_v1 = vrot.slane %v3190_v60, %v3188_v58 }
  0x62   :  { %1300 = vmatpush1.bf16.msra.mxu0 %v2710_v0 }
  0x63   :  { %1301 = vmatprep.subr.bf16.mxu0 %v2715_v2  ;;  %v590_v2 = vsub.s32 3, %v3142_v4 }
  0x64   :  { %2591 = vmatpush3.bf16.msra.mxu1 %v2740_v5 }
  0x65   :  { %2592 = vmatprep.subr.bf16.mxu1 %v2744_v21 }
  0x66   :  { %1302 = vmatpush1.bf16.msra.mxu0 %v2713_v3  ;;  %v583_v3 = vrot.slane %v3190_v60, %v3193_v61 }
  0x67   :  { %1303 = vmatprep.subr.bf16.mxu0 %v2718_v6 }
  0x68   :  { %2593 = vmatpush3.bf16.msra.mxu1 %v2745_v23  ;;  %v602_v23 = vsub.s32 6, %v3142_v4 }
  0x69   :  { %2594 = vmatprep.subr.bf16.mxu1 %v2749_v26  ;;  %v606_v26 = vsub.s32 7, %v3142_v4 }
  0x6a   :  { %1304 = vmatpush1.bf16.msra.mxu0 %v2716_v7 }
  0x6b   :  { %1305 = vmatprep.subr.bf16.mxu0 %v2721_v8 }
  0x6c   :  { %2595 = vmatpush3.bf16.msra.mxu1 %v2750_v27 }
  0x6d   :  { %2596 = vmatprep.subr.bf16.mxu1 %v2754_v29  ;;  %v2771_v29 = vld [vmem:[#allocation6 + $0x180] ss:$12 sps:$4 sm:$0xff]  }
  0x6e   :  { %1306 = vmatpush1.bf16.msra.mxu0 %v2719_v9 }
  0x6f   :  { %1307 = vmatprep.subr.bf16.mxu0 %v2724_v10 }
  0x70   :  { %2597 = vmatpush3.bf16.msra.mxu1 %v2755_v31 }
  0x71   :  { %2598 = vmatprep.subr.bf16.mxu1 %v2759_v34  ;;  %v2778_v34 = vld [vmem:[#allocation6 + $0x19c] ss:$12 sps:$4 sm:$0xff]  }
  0x72   :  { %1308 = vmatpush1.bf16.msra.mxu0 %v2722_v11 }
  0x73   :  { %1309 = vmatprep.subr.bf16.mxu0 %v2727_v12  ;;  %v594_v12 = vsub.s32 4, %v3142_v4 }
  0x74   :  { %2599 = vmatpush3.bf16.msra.mxu1 %v2760_v35  ;;  %v2779_v35 = vld [vmem:[#allocation6 + $0x260] ss:$12 sps:$4 sm:$0xff]  }
  0x75   :  { %2600 = vmatprep.subr.bf16.mxu1 %v2764_v37 }
  0x76   :  { %1310 = vmatpush1.bf16.msra.mxu0 %v2725_v13 }
  0x77   :  { %1311 = vmatprep.subr.bf16.mxu0 %v2730_v14  ;;  %v591_v14 = vrot.slane %v3190_v60, %v590_v2  ;;  %v2794_v2 = vld [vmem:[#allocation6 + $0x2a8] ss:$12 sps:$4 sm:$0xff]  }
  0x78   :  { %2601 = vmatpush3.bf16.msra.mxu1 %v2765_v39 }
  0x79   :  { %2602 = vmatprep.subr.bf16.mxu1 %v2769_v41 }
  0x7a   :  { %1312 = vmatpush1.bf16.msra.mxu0 %v2728_v15 }
  0x7b   :  { %1313 = vmatprep.subr.bf16.mxu0 %v2733_v16 }
  0x7c   :  { %2603 = vmatpush3.bf16.msra.mxu1 %v2770_v43  ;;  %v607_v43 = vrot.slane %v3190_v60, %v606_v26 }
  0x7d   :  { %2610 = vmatprep.subr.bf16.mxu1 %v2774_v45  ;;  %v2776_v45 = vld [vmem:[#allocation6 + $0x198] ss:$12 sps:$4 sm:$0xff]  }
  0x7e   :  { %1314 = vmatpush1.bf16.msra.mxu0 %v2731_v17 }
  0x7f   :  { %1315 = vmatprep.subr.bf16.mxu0 %v2738_v18 }
  0x82   :  { %1316 = vmatpush1.bf16.msra.mxu0 %v2736_v19 }
  0x83   :  { %1317 = vmatprep.subr.bf16.mxu0 %v2743_v20 }
  0x86   :  { %1318 = vmatpush1.bf16.msra.mxu0 %v2741_v22 }
  0x87   :  { %1319 = vmatprep.subr.bf16.mxu0 %v2748_v25 }
  0x8a   :  { %1320 = vmatpush1.bf16.msra.mxu0 %v2746_v24  ;;  %v595_v24 = vrot.slane %v3190_v60, %v594_v12 }
  0x8b   :  { %1321 = vmatprep.subr.bf16.mxu0 %v2753_v28 }
  0x8e   :  { %1322 = vmatpush1.bf16.msra.mxu0 %v2751_v30  ;;  %v2775_v30 = vld [vmem:[#allocation6 + $0x188] ss:$12 sps:$4 sm:$0xff]  }
  0x8f   :  { %1323 = vmatprep.subr.bf16.mxu0 %v2758_v33 }
  0x92   :  { %1324 = vmatpush1.bf16.msra.mxu0 %v2756_v32 }
  0x93   :  { %1325 = vmatprep.subr.bf16.mxu0 %v2763_v36 }
  0x96   :  { %1326 = vmatpush1.bf16.msra.mxu0 %v2761_v38  ;;  %v603_v38 = vrot.slane %v3190_v60, %v602_v23  ;;  %v2810_v23 = vld [vmem:[#allocation6 + $0x230] ss:$12 sps:$4 sm:$0xff]  }
  0x97   :  { %1327 = vmatprep.subr.bf16.mxu0 %v2768_v40 }
  0x9a   :  { %1328 = vmatpush1.bf16.msra.mxu0 %v2766_v42 }
  0x9b   :  { %1338 = vmatprep.subr.bf16.mxu0 %v2773_v44 }
 0x118   :  { %v191_v46 = vpop.f32.mrb[0].mxu0  ;;  %v232_v50 = vpop.f32.mrb[0].mxu1 }
 0x119   :  { %v193_v47 = vpop.f32.mrb[1].mxu0  ;;  %v234_v51 = vpop.f32.mrb[1].mxu1 }
 0x11a   :  { %v195_v48 = vpop.f32.mrb[2].mxu0  ;;  %v236_v52 = vpop.f32.mrb[2].mxu1 }
 0x11b   :  { %v196_v49 = vpop.f32.mrb[3].mxu0  ;;  %v237_v53 = vpop.f32.mrb[3].mxu1 }
 0x11c   :  { %v2783_v49 = vld [vmem:[#allocation6 + $0x1b4] ss:$12 sps:$4 sm:$0xff]  }
 0x120   :  { %v273_v54 = vpop.f32.mrb[4].mxu0  ;;  %v314_v59 = vpop.f32.mrb[4].mxu1 }
 0x121   :  { %v275_v55 = vpop.f32.mrb[5].mxu0  ;;  %v316_v62 = vpop.f32.mrb[5].mxu1 }
 0x122   :  { %v277_v56 = vpop.f32.mrb[6].mxu0  ;;  %v318_v63 = vpop.f32.mrb[6].mxu1 }
 0x123   :  { %v278_v57 = vpop.f32.mrb[7].mxu0  ;;  %v319_v0 = vpop.f32.mrb[7].mxu1  ;;  %v2781_v56 = vld [vmem:[#allocation6 + $0x1b0] ss:$12 sps:$4 sm:$0xff]  }
 0x124   :  { %v2785_v57 = vld [vmem:[#allocation6 + $0x1b8] ss:$12 sps:$4 sm:$0xff]   ;;  %v2789_v63 = vld [vmem:[#allocation6 + $0x290] ss:$12 sps:$4 sm:$0xff]   ;;  %v2786_v0 = vld [vmem:[#allocation6 + $0x1c8] ss:$12 sps:$4 sm:$0xff]  }
 0x128   :  { %v444_v5 = vpop.f32.mrb[8].mxu0 }
 0x129   :  { %v445_v6 = vadd.f32 %v444_v5, %v191_v46  ;;  %v446_v7 = vpop.f32.mrb[9].mxu0  ;;  %v2780_v46 = vld [vmem:[#allocation6 + $0x1a0] ss:$12 sps:$4 sm:$0xff]  }
 0x12a   :  { %v447_v8 = vadd.f32 %v446_v7, %v193_v47  ;;  %v448_v9 = vpop.f32.mrb[10].mxu0  ;;  %v485_v13 = vpop.f32.mrb[8].mxu1  ;;  %v2791_v5 = vld [vmem:[#allocation6 + $0x1e0] ss:$12 sps:$4 sm:$0xff]   ;;  %v2798_v7 = vld [vmem:[#allocation6 + $0x1fc] ss:$12 sps:$4 sm:$0xff]  }
 0x12b   :  { %v616_v10 = vadd.f32 %v579_v1, %v445_v6  ;;  %v449_v11 = vpop.f32.mrb[11].mxu0  ;;  %v3202_v16 = vadd.f32 %v485_v13, %v232_v50  ;;  %v487_v17 = vpop.f32.mrb[9].mxu1  ;;  %v2784_v50 = vld [vmem:[#allocation6 + $0x278] ss:$12 sps:$4 sm:$0xff]   ;;  %v3218_v6 = vsub.s32 2, %v3142_v4  ;;  %v598_v9 = vsub.s32 5, %v3142_v4 }
 0x12c   :  { %v617_v15 = vadd.f32 %v583_v3, %v447_v8  ;;  %v488_v19 = vadd.f32 %v487_v17, %v234_v51  ;;  %v489_v20 = vpop.f32.mrb[10].mxu1  ;;  %v2793_v1 = vld [vmem:[#allocation6 + $0x1e4] ss:$12 sps:$4 sm:$0xff]   ;;  %v2795_v3 = vld [vmem:[#allocation6 + $0x1e8] ss:$12 sps:$4 sm:$0xff]  }
 0x12d   :  { %v624_v18 = vmax.f32 %v616_v10, 0.0  ;;  %v490_v22 = vpop.f32.mrb[11].mxu1  ;;  %v2799_v8 = vld [vmem:[#allocation6 + $0x2c0] ss:$12 sps:$4 sm:$0xff]   ;;  %v2796_v10 = vld [vmem:[#allocation6 + $0x1f8] ss:$12 sps:$4 sm:$0xff]   ;;  %v587_v12 = vrot.slane %v3190_v60, %v3218_v6 }
 0x12e   :  { %v625_v21 = vmax.f32 %v617_v15, 0.0  ;;  %v619_v25 = vadd.f32 %v591_v14, %v488_v19  ;;  %v2800_v11 = vld [vmem:[#allocation6 + $0x200] ss:$12 sps:$4 sm:$0xff]   ;;  %v2804_v14 = vld [vmem:[#allocation6 + $0x2d8] ss:$12 sps:$4 sm:$0xff]   ;;  %v599_v15 = vrot.slane %v3190_v60, %v598_v9 }
 0x12f   :  { %v632_v31 = vpack.c.bf16 %v624_v18, %v624_v18  ;;  %v2803_v13 = vld [vmem:[#allocation6 + $0x214] ss:$12 sps:$4 sm:$0xff]   ;;  %v2801_v17 = vld [vmem:[#allocation6 + $0x210] ss:$12 sps:$4 sm:$0xff]   ;;  %v2805_v18 = vld [vmem:[#allocation6 + $0x218] ss:$12 sps:$4 sm:$0xff]   ;;  %v618_v19 = vadd.f32 %v587_v12, %v3202_v16 }
 0x130   :  { %v633_v27 = vpack.c.bf16 %v625_v21, %v625_v21  ;;  %v526_v28 = vpop.f32.mrb[12].mxu0  ;;  %v627_v36 = vmax.f32 %v619_v25, 0.0  ;;  %v2808_v4 = vld [vmem:[#allocation6 + $0x22c] ss:$12 sps:$4 sm:$0xff]   ;;  %v2809_v20 = vld [vmem:[#allocation6 + $0x2f0] ss:$12 sps:$4 sm:$0xff]  }
 0x131   :  { %v527_v32 = vadd.f32 %v526_v28, %v273_v54  ;;  %v528_v33 = vpop.f32.mrb[13].mxu0  ;;  %v2806_v22 = vld [vmem:[#allocation6 + $0x228] ss:$12 sps:$4 sm:$0xff]   ;;  %v2813_v60 = vld [vmem:[#allocation6 + $0x244] ss:$12 sps:$4 sm:$0xff]  }
 0x132   :  { %v3207_v37 = vadd.f32 %v528_v33, %v275_v55  ;;  %1329 = vmatprep.mubr.bf16.mxu0 %v633_v27  ;;  %1411 = vmatprep.mubr.bf16.mxu1 %v633_v27  ;;  %v530_v39 = vpop.f32.mrb[14].mxu0  ;;  %v635_v41 = vpack.c.bf16 %v627_v36, %v627_v36  ;;  %v567_v42 = vpop.f32.mrb[12].mxu1  ;;  %v2816_v25 = vld [vmem:[#allocation6 + $0x304] ss:$12 sps:$4 sm:$0xff]   ;;  %v2811_v27 = vld [vmem:[#allocation6 + $0x240] ss:$12 sps:$4 sm:$0xff]  }
 0x133   :  { %v3210_v40 = vadd.f32 %v595_v24, %v527_v32  ;;  %1330 = vmatmul.mubr.bf16.vlgmr.msra.gmra.mrb[16].mxu0 %v632_v31  ;;  %1412 = vmatmul.mubr.bf16.vlgmr.msra.gmra.mrb[16].mxu1 %v632_v31  ;;  %v531_v44 = vpop.f32.mrb[15].mxu0  ;;  %v568_v47 = vadd.f32 %v567_v42, %v314_v59  ;;  %v569_v48 = vpop.f32.mrb[13].mxu1  ;;  %v2788_v59 = vld [vmem:[#allocation6 + $0x1cc] ss:$12 sps:$4 sm:$0xff]   ;;  %v626_v24 = vmax.f32 %v618_v19, 0.0 }
 0x134   :  { %1339 = vmatpush1.bf16.msra.mxu0 %v2771_v29  ;;  %2611 = vmatpush3.bf16.msra.mxu1 %v2775_v30  ;;  %v570_v51 = vadd.f32 %v569_v48, %v316_v62  ;;  %v571_v52 = vpop.f32.mrb[14].mxu1  ;;  %v2790_v62 = vld [vmem:[#allocation6 + $0x1d0] ss:$12 sps:$4 sm:$0xff]   ;;  %v621_v21 = vadd.f32 %v599_v15, %v3207_v37  ;;  %v2814_v16 = vld [vmem:[#allocation6 + $0x300] ss:$12 sps:$4 sm:$0xff]  }
 0x135   :  { %1340 = vmatprep.subr.bf16.mxu0 %v2778_v34  ;;  %2612 = vmatprep.subr.bf16.mxu1 %v2779_v35  ;;  %v3213_v53 = vadd.f32 %v603_v38, %v568_v47  ;;  %v572_v54 = vpop.f32.mrb[15].mxu1  ;;  %v3226_v28 = vpack.c.bf16 %v626_v24, %v626_v24  ;;  %v2819_v29 = vld [vmem:[#allocation6 + $0x25c] ss:$12 sps:$4 sm:$0xff]   ;;  %v2817_v32 = vld [vmem:[#allocation6 + $0x258] ss:$12 sps:$4 sm:$0xff]  }
 0x136   :  { %1370 = vmatprep.mubr.bf16.mxu0 %v635_v41  ;;  %1451 = vmatprep.mubr.bf16.mxu1 %v635_v41  ;;  %v3215_v55 = vadd.f32 %v607_v43, %v570_v51  ;;  %v629_v26 = vmax.f32 %v621_v21, 0.0  ;;  %v2822_v30 = vld [vmem:[#allocation6 + $0x31c] ss:$12 sps:$4 sm:$0xff]   ;;  %v2820_v33 = vld [vmem:[#allocation6 + $0x318] ss:$12 sps:$4 sm:$0xff]  }
 0x137   :  { %v2825_v34 = vld [vmem:[#allocation6 + $0x274] ss:$12 sps:$4 sm:$0xff]   ;;  %v2823_v36 = vld [vmem:[#allocation6 + $0x270] ss:$12 sps:$4 sm:$0xff]   ;;  %v2831_v38 = vld [vmem:[#allocation6 + $0x28c] ss:$12 sps:$4 sm:$0xff]  }
 0x138   :  { %1341 = vmatpush1.bf16.msra.mxu0 %v2776_v45  ;;  %2613 = vmatpush3.bf16.msra.mxu1 %v2780_v46  ;;  %v3228_v31 = vpack.c.bf16 %v629_v26, %v629_v26  ;;  %v2828_v35 = vld [vmem:[#allocation6 + $0x334] ss:$12 sps:$4 sm:$0xff]   ;;  %v2826_v37 = vld [vmem:[#allocation6 + $0x330] ss:$12 sps:$4 sm:$0xff]   ;;  %v2834_v39 = vld [vmem:[#allocation6 + $0x34c] ss:$12 sps:$4 sm:$0xff]  }
 0x139   :  { %1342 = vmatprep.subr.bf16.mxu0 %v2783_v49  ;;  %2614 = vmatprep.subr.bf16.mxu1 %v2784_v50  ;;  %v2829_v41 = vld [vmem:[#allocation6 + $0x288] ss:$12 sps:$4 sm:$0xff]   ;;  %v2837_v43 = vld [vmem:[#allocation6 + $0x2a4] ss:$12 sps:$4 sm:$0xff]   ;;  %v2835_v45 = vld [vmem:[#allocation6 + $0x2a0] ss:$12 sps:$4 sm:$0xff]  }
 0x13a   :  { %v2832_v42 = vld [vmem:[#allocation6 + $0x348] ss:$12 sps:$4 sm:$0xff]   ;;  %v2840_v44 = vld [vmem:[#allocation6 + $0x364] ss:$12 sps:$4 sm:$0xff]   ;;  %v2838_v46 = vld [vmem:[#allocation6 + $0x360] ss:$12 sps:$4 sm:$0xff]  }
 0x13b   :  { %v2843_v47 = vld [vmem:[#allocation6 + $0x2bc] ss:$12 sps:$4 sm:$0xff]   ;;  %v2841_v49 = vld [vmem:[#allocation6 + $0x2b8] ss:$12 sps:$4 sm:$0xff]   ;;  %v2849_v51 = vld [vmem:[#allocation6 + $0x2d4] ss:$12 sps:$4 sm:$0xff]  }
 0x13c   :  { %1343 = vmatpush1.bf16.msra.mxu0 %v2781_v56  ;;  %2615 = vmatpush3.bf16.msra.mxu1 %v2785_v57  ;;  %v2846_v48 = vld [vmem:[#allocation6 + $0x37c] ss:$12 sps:$4 sm:$0xff]   ;;  %v2844_v50 = vld [vmem:[#allocation6 + $0x378] ss:$12 sps:$4 sm:$0xff]   ;;  %v2852_v52 = vld [vmem:[#allocation6 + $0x394] ss:$12 sps:$4 sm:$0xff]  }
 0x13d   :  { %1344 = vmatprep.subr.bf16.mxu0 %v2788_v59  ;;  %2616 = vmatprep.subr.bf16.mxu1 %v2789_v63  ;;  %v2847_v54 = vld [vmem:[#allocation6 + $0x2d0] ss:$12 sps:$4 sm:$0xff]   ;;  %v2855_v57 = vld [vmem:[#allocation6 + $0x2ec] ss:$12 sps:$4 sm:$0xff]   ;;  %v2853_v63 = vld [vmem:[#allocation6 + $0x2e8] ss:$12 sps:$4 sm:$0xff]  }
 0x13e   :  { %v2850_v56 = vld [vmem:[#allocation6 + $0x390] ss:$12 sps:$4 sm:$0xff]   ;;  %v2858_v59 = vld [vmem:[#allocation6 + $0x3ac] ss:$12 sps:$4 sm:$0xff]   ;;  %v2883_v21 = vld [vmem:[#allocation6 + $0x368] ss:$12 sps:$4 sm:$0xff]  }
 0x13f   :  { %v2868_v9 = vld [vmem:[#allocation6 + $0x320] ss:$12 sps:$4 sm:$0xff]   ;;  %v2869_v12 = vld [vmem:[#allocation6 + $0x3f0] ss:$12 sps:$4 sm:$0xff]   ;;  %v2884_v24 = vld [vmem:[#allocation6 + $0x438] ss:$12 sps:$4 sm:$0xff]  }
 0x140   :  { %1345 = vmatpush1.bf16.msra.mxu0 %v2786_v0  ;;  %2617 = vmatpush3.bf16.msra.mxu1 %v2790_v62  ;;  %v2856_v0 = vld [vmem:[#allocation6 + $0x3a8] ss:$12 sps:$4 sm:$0xff]   ;;  %v2861_v62 = vld [vmem:[#allocation6 + $0x3c4] ss:$12 sps:$4 sm:$0xff]  }
 0x141   :  { %1346 = vmatprep.subr.bf16.mxu0 %v2793_v1  ;;  %2618 = vmatprep.subr.bf16.mxu1 %v2794_v2  ;;  %v2862_v1 = vld [vmem:[#allocation6 + $0x3c8] ss:$12 sps:$4 sm:$0xff]   ;;  %v2859_v2 = vld [vmem:[#allocation6 + $0x3c0] ss:$12 sps:$4 sm:$0xff]   ;;  %v2877_v15 = vld [vmem:[#allocation6 + $0x410] ss:$12 sps:$4 sm:$0xff]  }
 0x142   :  { %v2881_v19 = vld [vmem:[#allocation6 + $0x424] ss:$12 sps:$4 sm:$0xff]  }
 0x143   :  { %v2892_v26 = vld [vmem:[#allocation6 + $0x458] ss:$12 sps:$4 sm:$0xff]  }
 0x144   :  { %1347 = vmatpush1.bf16.msra.mxu0 %v2791_v5  ;;  %2619 = vmatpush3.bf16.msra.mxu1 %v2795_v3  ;;  %v2863_v5 = vld [vmem:[#allocation6 + $0x308] ss:$12 sps:$4 sm:$0xff]  }
 0x145   :  { %1348 = vmatprep.subr.bf16.mxu0 %v2798_v7  ;;  %2620 = vmatprep.subr.bf16.mxu1 %v2799_v8  ;;  %v2866_v3 = vld [vmem:[#allocation6 + $0x3dc] ss:$12 sps:$4 sm:$0xff]   ;;  %v2867_v7 = vld [vmem:[#allocation6 + $0x3e0] ss:$12 sps:$4 sm:$0xff]   ;;  %v2864_v8 = vld [vmem:[#allocation6 + $0x3d8] ss:$12 sps:$4 sm:$0xff]  }
 0x148   :  { %1349 = vmatpush1.bf16.msra.mxu0 %v2796_v10  ;;  %2621 = vmatpush3.bf16.msra.mxu1 %v2800_v11  ;;  %v2871_v10 = vld [vmem:[#allocation6 + $0x3f4] ss:$12 sps:$4 sm:$0xff]   ;;  %v2872_v11 = vld [vmem:[#allocation6 + $0x3f8] ss:$12 sps:$4 sm:$0xff]  }
 0x149   :  { %1350 = vmatprep.subr.bf16.mxu0 %v2803_v13  ;;  %2622 = vmatprep.subr.bf16.mxu1 %v2804_v14  ;;  %v2873_v13 = vld [vmem:[#allocation6 + $0x338] ss:$12 sps:$4 sm:$0xff]  }
 0x14a   :  { %v2876_v14 = vld [vmem:[#allocation6 + $0x40c] ss:$12 sps:$4 sm:$0xff]  }
 0x14c   :  { %1351 = vmatpush1.bf16.msra.mxu0 %v2801_v17  ;;  %2623 = vmatpush3.bf16.msra.mxu1 %v2805_v18  ;;  %v2874_v17 = vld [vmem:[#allocation6 + $0x408] ss:$12 sps:$4 sm:$0xff]   ;;  %v2878_v18 = vld [vmem:[#allocation6 + $0x350] ss:$12 sps:$4 sm:$0xff]  }
 0x14d   :  { %1352 = vmatprep.subr.bf16.mxu0 %v2808_v4  ;;  %2624 = vmatprep.subr.bf16.mxu1 %v2809_v20  ;;  %v2882_v4 = vld [vmem:[#allocation6 + $0x428] ss:$12 sps:$4 sm:$0xff]   ;;  %v2879_v20 = vld [vmem:[#allocation6 + $0x420] ss:$12 sps:$4 sm:$0xff]  }
 0x150   :  { %1353 = vmatpush1.bf16.msra.mxu0 %v2806_v22  ;;  %2625 = vmatpush3.bf16.msra.mxu1 %v2810_v23  ;;  %v2886_v22 = vld [vmem:[#allocation6 + $0x43c] ss:$12 sps:$4 sm:$0xff]   ;;  %v2887_v23 = vld [vmem:[#allocation6 + $0x440] ss:$12 sps:$4 sm:$0xff]  }
 0x151   :  { %1354 = vmatprep.subr.bf16.mxu0 %v2813_v60  ;;  %2153 = vmatprep.subr.bf16.mxu1 %v2816_v25  ;;  %v2888_v60 = vld [vmem:[#allocation6 + $0x380] ss:$12 sps:$4 sm:$0xff]  }
 0x152   :  { %v2891_v25 = vld [vmem:[#allocation6 + $0x454] ss:$12 sps:$4 sm:$0xff]  }
 0x153   :  { %1452 = vmatmul.mubr.bf16.vlgmr.msra.gmra.mrb[20].mxu1 %v3226_v28 }
 0x154   :  { %1355 = vmatpush1.bf16.msra.mxu0 %v2811_v27  ;;  %2154 = vmatpush1.bf16.msra.mxu1 %v2814_v16  ;;  %v2889_v27 = vld [vmem:[#allocation6 + $0x450] ss:$12 sps:$4 sm:$0xff]   ;;  %v2893_v16 = vld [vmem:[#allocation6 + $0x398] ss:$12 sps:$4 sm:$0xff]  }
 0x155   :  { %2185 = vmatprep.mubr.bf16.mxu1 %v3228_v31  ;;  %1356 = vmatprep.subr.bf16.mxu0 %v2819_v29  ;;  %v2897_v29 = vld [vmem:[#allocation6 + $0x470] ss:$12 sps:$4 sm:$0xff]  }
 0x156   :  { %2155 = vmatprep.subr.bf16.mxu1 %v2822_v30  ;;  %v2894_v30 = vld [vmem:[#allocation6 + $0x468] ss:$12 sps:$4 sm:$0xff]  }
 0x158   :  { %1357 = vmatpush1.bf16.msra.mxu0 %v2817_v32  ;;  %2156 = vmatpush1.bf16.msra.mxu1 %v2820_v33  ;;  %v628_v32 = vmax.f32 %v3210_v40, 0.0  ;;  %v2901_v33 = vld [vmem:[#allocation6 + $0x484] ss:$12 sps:$4 sm:$0xff]  }
 0x159   :  { %1358 = vmatprep.subr.bf16.mxu0 %v2825_v34  ;;  %2157 = vmatprep.subr.bf16.mxu1 %v2828_v35  ;;  %v2902_v34 = vld [vmem:[#allocation6 + $0x548] ss:$12 sps:$4 sm:$0xff]   ;;  %v631_v35 = vmax.f32 %v3215_v55, 0.0  ;;  %v2904_v40 = vld [vmem:[#allocation6 + $0x498] ss:$12 sps:$4 sm:$0xff]  }
 0x15a   :  { %v2912_v55 = vld [vmem:[#allocation6 + $0x578] ss:$12 sps:$4 sm:$0xff]  }
 0x15c   :  { %1359 = vmatpush1.bf16.msra.mxu0 %v2823_v36  ;;  %2158 = vmatpush1.bf16.msra.mxu1 %v2826_v37  ;;  %v2899_v36 = vld [vmem:[#allocation6 + $0x480] ss:$12 sps:$4 sm:$0xff]   ;;  %v636_v37 = vpack.c.bf16 %v628_v32, %v628_v32 }
 0x15d   :  { %1360 = vmatprep.subr.bf16.mxu0 %v2831_v38  ;;  %2159 = vmatprep.subr.bf16.mxu1 %v2834_v39  ;;  %v2903_v38 = vld [vmem:[#allocation6 + $0x488] ss:$12 sps:$4 sm:$0xff]   ;;  %v639_v39 = vpack.c.bf16 %v631_v35, %v631_v35 }
 0x160   :  { %1361 = vmatpush1.bf16.msra.mxu0 %v2829_v41  ;;  %2160 = vmatpush1.bf16.msra.mxu1 %v2832_v42  ;;  %v2906_v41 = vld [vmem:[#allocation6 + $0x49c] ss:$12 sps:$4 sm:$0xff]   ;;  %v2907_v42 = vld [vmem:[#allocation6 + $0x560] ss:$12 sps:$4 sm:$0xff]  }
 0x161   :  { %1362 = vmatprep.subr.bf16.mxu0 %v2837_v43  ;;  %2161 = vmatprep.subr.bf16.mxu1 %v2840_v44  ;;  %v2908_v43 = vld [vmem:[#allocation6 + $0x4a0] ss:$12 sps:$4 sm:$0xff]  }
 0x162   :  { %v2911_v44 = vld [vmem:[#allocation6 + $0x4b4] ss:$12 sps:$4 sm:$0xff]  }
 0x164   :  { %1363 = vmatpush1.bf16.msra.mxu0 %v2835_v45  ;;  %2162 = vmatpush1.bf16.msra.mxu1 %v2838_v46  ;;  %v2909_v45 = vld [vmem:[#allocation6 + $0x4b0] ss:$12 sps:$4 sm:$0xff]   ;;  %v2913_v46 = vld [vmem:[#allocation6 + $0x4b8] ss:$12 sps:$4 sm:$0xff]  }
 0x165   :  { %1364 = vmatprep.subr.bf16.mxu0 %v2843_v47  ;;  %2163 = vmatprep.subr.bf16.mxu1 %v2846_v48  ;;  %v2916_v47 = vld [vmem:[#allocation6 + $0x4cc] ss:$12 sps:$4 sm:$0xff]   ;;  %v2917_v48 = vld [vmem:[#allocation6 + $0x590] ss:$12 sps:$4 sm:$0xff]  }
 0x168   :  { %1365 = vmatpush1.bf16.msra.mxu0 %v2841_v49  ;;  %2164 = vmatpush1.bf16.msra.mxu1 %v2844_v50  ;;  %v2914_v49 = vld [vmem:[#allocation6 + $0x4c8] ss:$12 sps:$4 sm:$0xff]   ;;  %v2918_v50 = vld [vmem:[#allocation6 + $0x4d0] ss:$12 sps:$4 sm:$0xff]  }
 0x169   :  { %1366 = vmatprep.subr.bf16.mxu0 %v2849_v51  ;;  %2165 = vmatprep.subr.bf16.mxu1 %v2852_v52  ;;  %v2921_v51 = vld [vmem:[#allocation6 + $0x4e4] ss:$12 sps:$4 sm:$0xff]   ;;  %v2922_v52 = vld [vmem:[#allocation6 + $0x5a8] ss:$12 sps:$4 sm:$0xff]  }
 0x16c   :  { %1367 = vmatpush1.bf16.msra.mxu0 %v2847_v54  ;;  %2166 = vmatpush1.bf16.msra.mxu1 %v2850_v56  ;;  %v2919_v54 = vld [vmem:[#allocation6 + $0x4e0] ss:$12 sps:$4 sm:$0xff]   ;;  %v2923_v56 = vld [vmem:[#allocation6 + $0x4e8] ss:$12 sps:$4 sm:$0xff]  }
 0x16d   :  { %1368 = vmatprep.subr.bf16.mxu0 %v2855_v57  ;;  %2167 = vmatprep.subr.bf16.mxu1 %v2858_v59  ;;  %v2926_v57 = vld [vmem:[#allocation6 + $0x4fc] ss:$12 sps:$4 sm:$0xff]   ;;  %v2927_v59 = vld [vmem:[#allocation6 + $0x5c0] ss:$12 sps:$4 sm:$0xff]  }
 0x170   :  { %1369 = vmatpush1.bf16.msra.mxu0 %v2853_v63  ;;  %2168 = vmatpush1.bf16.msra.mxu1 %v2856_v0  ;;  %v2924_v63 = vld [vmem:[#allocation6 + $0x4f8] ss:$12 sps:$4 sm:$0xff]   ;;  %v2928_v0 = vld [vmem:[#allocation6 + $0x500] ss:$12 sps:$4 sm:$0xff]  }
 0x171   :  { %2169 = vmatprep.subr.bf16.mxu1 %v2861_v62  ;;  %2632 = vmatprep.subr.bf16.mxu0 %v2862_v1  ;;  %v2931_v62 = vld [vmem:[#allocation6 + $0x514] ss:$12 sps:$4 sm:$0xff]   ;;  %v2932_v1 = vld [vmem:[#allocation6 + $0x5d8] ss:$12 sps:$4 sm:$0xff]  }
 0x173   :  { %1371 = vmatmul.mubr.bf16.vlgmr.msra.gmra.mrb[16].mxu0 %v3226_v28  ;;  %v2896_v28 = vld [vmem:[#allocation6 + $0x46c] ss:$12 sps:$4 sm:$0xff]  }
 0x174   :  { %2170 = vmatpush1.bf16.msra.mxu1 %v2859_v2  ;;  %2633 = vmatpush3.bf16.msra.mxu0 %v2863_v5  ;;  %v2929_v2 = vld [vmem:[#allocation6 + $0x510] ss:$12 sps:$4 sm:$0xff]   ;;  %v2933_v5 = vld [vmem:[#allocation6 + $0x518] ss:$12 sps:$4 sm:$0xff]  }
 0x175   :  { %2267 = vmatprep.mubr.bf16.mxu0 %v3228_v31  ;;  %2171 = vmatprep.subr.bf16.mxu1 %v2866_v3  ;;  %v2898_v31 = vld [vmem:[#allocation6 + $0x3b0] ss:$12 sps:$4 sm:$0xff]   ;;  %v2936_v3 = vld [vmem:[#allocation6 + $0x52c] ss:$12 sps:$4 sm:$0xff]  }
 0x176   :  { %2634 = vmatprep.subr.bf16.mxu0 %v2867_v7  ;;  %v2937_v7 = vld [vmem:[#allocation6 + $0x5f0] ss:$12 sps:$4 sm:$0xff]  }
 0x178   :  { %2172 = vmatpush1.bf16.msra.mxu1 %v2864_v8  ;;  %2635 = vmatpush3.bf16.msra.mxu0 %v2868_v9  ;;  %v2934_v8 = vld [vmem:[#allocation6 + $0x528] ss:$12 sps:$4 sm:$0xff]   ;;  %v2938_v9 = vld [vmem:[#allocation6 + $0x530] ss:$12 sps:$4 sm:$0xff]  }
 0x179   :  { %2173 = vmatprep.subr.bf16.mxu1 %v2871_v10  ;;  %2636 = vmatprep.subr.bf16.mxu0 %v2872_v11  ;;  %v2941_v10 = vld [vmem:[#allocation6 + $0x544] ss:$12 sps:$4 sm:$0xff]   ;;  %v630_v11 = vmax.f32 %v3213_v53, 0.0 }
 0x17a   :  { %v2953_v53 = vld [vmem:[#allocation6 + $0x5a4] ss:$12 sps:$4 sm:$0xff]  }
 0x17c   :  { %2174 = vmatpush1.bf16.msra.mxu1 %v2869_v12  ;;  %2637 = vmatpush3.bf16.msra.mxu0 %v2873_v13  ;;  %v2939_v12 = vld [vmem:[#allocation6 + $0x540] ss:$12 sps:$4 sm:$0xff]   ;;  %v2944_v13 = vld [vmem:[#allocation6 + $0x55c] ss:$12 sps:$4 sm:$0xff]  }
 0x17d   :  { %2175 = vmatprep.subr.bf16.mxu1 %v2876_v14  ;;  %2638 = vmatprep.subr.bf16.mxu0 %v2877_v15  ;;  %v638_v14 = vpack.c.bf16 %v630_v11, %v630_v11  ;;  %v2942_v15 = vld [vmem:[#allocation6 + $0x558] ss:$12 sps:$4 sm:$0xff]  }
 0x180   :  { %2176 = vmatpush1.bf16.msra.mxu1 %v2874_v17  ;;  %2639 = vmatpush3.bf16.msra.mxu0 %v2878_v18  ;;  %v2947_v17 = vld [vmem:[#allocation6 + $0x574] ss:$12 sps:$4 sm:$0xff]   ;;  %v2945_v18 = vld [vmem:[#allocation6 + $0x570] ss:$12 sps:$4 sm:$0xff]  }
 0x181   :  { %2177 = vmatprep.subr.bf16.mxu1 %v2881_v19  ;;  %2640 = vmatprep.subr.bf16.mxu0 %v2882_v4  ;;  %v2950_v19 = vld [vmem:[#allocation6 + $0x58c] ss:$12 sps:$4 sm:$0xff]   ;;  %v2948_v4 = vld [vmem:[#allocation6 + $0x588] ss:$12 sps:$4 sm:$0xff]  }
 0x184   :  { %2178 = vmatpush1.bf16.msra.mxu1 %v2879_v20  ;;  %2641 = vmatpush3.bf16.msra.mxu0 %v2883_v21  ;;  %v2951_v20 = vld [vmem:[#allocation6 + $0x5a0] ss:$12 sps:$4 sm:$0xff]   ;;  %v2956_v21 = vld [vmem:[#allocation6 + $0x5bc] ss:$12 sps:$4 sm:$0xff]  }
 0x185   :  { %2179 = vmatprep.subr.bf16.mxu1 %v2886_v22  ;;  %2642 = vmatprep.subr.bf16.mxu0 %v2887_v23  ;;  %v2954_v22 = vld [vmem:[#allocation6 + $0x5b8] ss:$12 sps:$4 sm:$0xff]   ;;  %v2959_v23 = vld [vmem:[#allocation6 + $0x5d4] ss:$12 sps:$4 sm:$0xff]  }
 0x188   :  { %2180 = vmatpush1.bf16.msra.mxu1 %v2884_v24  ;;  %2643 = vmatpush3.bf16.msra.mxu0 %v2888_v60  ;;  %v2957_v24 = vld [vmem:[#allocation6 + $0x5d0] ss:$12 sps:$4 sm:$0xff]   ;;  %v2962_v60 = vld [vmem:[#allocation6 + $0x5ec] ss:$12 sps:$4 sm:$0xff]  }
 0x189   :  { %2181 = vmatprep.subr.bf16.mxu1 %v2891_v25  ;;  %2644 = vmatprep.subr.bf16.mxu0 %v2892_v26  ;;  %v2960_v25 = vld [vmem:[#allocation6 + $0x5e8] ss:$12 sps:$4 sm:$0xff]  }
 0x18c   :  { %2182 = vmatpush1.bf16.msra.mxu1 %v2889_v27  ;;  %2645 = vmatpush3.bf16.msra.mxu0 %v2893_v16 }
 0x18d   :  { %2183 = vmatprep.subr.bf16.mxu1 %v2896_v28  ;;  %2646 = vmatprep.subr.bf16.mxu0 %v2897_v29 }
 0x190   :  { %2184 = vmatpush1.bf16.msra.mxu1 %v2894_v30  ;;  %2647 = vmatpush3.bf16.msra.mxu0 %v2898_v31  ;;  %v768_v30 = vld [vmem:[%s3279_s6] sm:$0x7] }
 0x191   :  { %2194 = vmatprep.subr.bf16.mxu1 %v2901_v33  ;;  %2654 = vmatprep.subr.bf16.mxu0 %v2902_v34  ;;  %v781_v31 = vrot.slane %v768_v30, %v3218_v6 }
 0x193   :  { %2186 = vmatmul.mubr.bf16.vlgmr.msra.gmra.mrb[24].mxu1 %v636_v37  ;;  %2268 = vmatmul.mubr.bf16.vlgmr.msra.gmra.mrb[20].mxu0 %v636_v37 }
 0x194   :  { %2195 = vmatpush1.bf16.msra.mxu1 %v2899_v36  ;;  %2226 = vmatprep.mubr.bf16.mxu1 %v639_v39 }
 0x195   :  { %2655 = vmatpush3.bf16.msra.mxu0 %v2903_v38  ;;  %2307 = vmatprep.mubr.bf16.mxu0 %v639_v39  ;;  %v773_v39 = vrot.slane %v768_v30, %v3188_v58 }
 0x196   :  { %2196 = vmatprep.subr.bf16.mxu1 %v2906_v41  ;;  %2656 = vmatprep.subr.bf16.mxu0 %v2907_v42  ;;  %v777_v41 = vrot.slane %v768_v30, %v3193_v61 }
 0x198   :  { %2197 = vmatpush1.bf16.msra.mxu1 %v2904_v40  ;;  %v1462_v40 = vld [vmem:[%s3280_s7] sm:$0x7] }
 0x199   :  { %2657 = vmatpush3.bf16.msra.mxu0 %v2908_v43  ;;  %2198 = vmatprep.subr.bf16.mxu1 %v2911_v44  ;;  %v1467_v44 = vrot.slane %v1462_v40, %v3188_v58 }
 0x19a   :  { %2658 = vmatprep.subr.bf16.mxu0 %v2912_v55 }
 0x19c   :  { %2199 = vmatpush1.bf16.msra.mxu1 %v2909_v45 }
 0x19d   :  { %2659 = vmatpush3.bf16.msra.mxu0 %v2913_v46  ;;  %2200 = vmatprep.subr.bf16.mxu1 %v2916_v47  ;;  %v1471_v46 = vrot.slane %v1462_v40, %v3193_v61 }
 0x19e   :  { %2660 = vmatprep.subr.bf16.mxu0 %v2917_v48 }
 0x1a0   :  { %2201 = vmatpush1.bf16.msra.mxu1 %v2914_v49 }
 0x1a1   :  { %2661 = vmatpush3.bf16.msra.mxu0 %v2918_v50  ;;  %2202 = vmatprep.subr.bf16.mxu1 %v2921_v51 }
 0x1a2   :  { %2662 = vmatprep.subr.bf16.mxu0 %v2922_v52  ;;  %v1475_v52 = vrot.slane %v1462_v40, %v3218_v6 }
 0x1a4   :  { %2203 = vmatpush1.bf16.msra.mxu1 %v2919_v54 }
 0x1a5   :  { %2663 = vmatpush3.bf16.msra.mxu0 %v2923_v56  ;;  %2204 = vmatprep.subr.bf16.mxu1 %v2926_v57 }
 0x1a6   :  { %2664 = vmatprep.subr.bf16.mxu0 %v2927_v59 }
 0x1a8   :  { %2205 = vmatpush1.bf16.msra.mxu1 %v2924_v63 }
 0x1a9   :  { %2665 = vmatpush3.bf16.msra.mxu0 %v2928_v0  ;;  %2206 = vmatprep.subr.bf16.mxu1 %v2931_v62 }
 0x1aa   :  { %2666 = vmatprep.subr.bf16.mxu0 %v2932_v1 }
 0x1ac   :  { %2207 = vmatpush1.bf16.msra.mxu1 %v2929_v2 }
 0x1ad   :  { %2667 = vmatpush3.bf16.msra.mxu0 %v2933_v5  ;;  %2208 = vmatprep.subr.bf16.mxu1 %v2936_v3  ;;  %v2489_v3 = vld [vmem:[%s3279_s6 + $0x3] sm:$0x7] }
 0x1ae   :  { %2668 = vmatprep.subr.bf16.mxu0 %v2937_v7  ;;  %v1637_v7 = vrot.slane %v2489_v3, %v3218_v6 }
 0x1b0   :  { %2209 = vmatpush1.bf16.msra.mxu1 %v2934_v8 }
 0x1b1   :  { %2669 = vmatpush3.bf16.msra.mxu0 %v2938_v9  ;;  %2210 = vmatprep.subr.bf16.mxu1 %v2941_v10 }
 0x1b4   :  { %2308 = vmatmul.mubr.bf16.vlgmr.msra.gmra.mrb[24].mxu0 %v638_v14  ;;  %2211 = vmatpush1.bf16.msra.mxu1 %v2939_v12 }
 0x1b5   :  { %2212 = vmatprep.subr.bf16.mxu1 %v2944_v13 }
 0x1b8   :  { %2213 = vmatpush1.bf16.msra.mxu1 %v2942_v15  ;;  %v1629_v15 = vrot.slane %v2489_v3, %v3188_v58 }
 0x1b9   :  { %2214 = vmatprep.subr.bf16.mxu1 %v2947_v17  ;;  %v1633_v17 = vrot.slane %v2489_v3, %v3193_v61 }
 0x1bc   :  { %2215 = vmatpush1.bf16.msra.mxu1 %v2945_v18 }
 0x1bd   :  { %2216 = vmatprep.subr.bf16.mxu1 %v2950_v19  ;;  %v2586_v19 = vld [vmem:[%s3280_s7 + $0x3] sm:$0x7] }
 0x1c0   :  { %2217 = vmatpush1.bf16.msra.mxu1 %v2948_v4 }
 0x1c1   :  { %2218 = vmatprep.subr.bf16.mxu1 %v2953_v53  ;;  %v2324_v53 = vrot.slane %v2586_v19, %v3188_v58  ;;  %v2488_v58 = vld [vmem:[%s3281_s8] ss:$0 sm:$0xff] }
 0x1c4   :  { %2219 = vmatpush1.bf16.msra.mxu1 %v2951_v20 }
 0x1c5   :  { %2220 = vmatprep.subr.bf16.mxu1 %v2956_v21 }
 0x1c8   :  { %2221 = vmatpush1.bf16.msra.mxu1 %v2954_v22  ;;  %v2328_v22 = vrot.slane %v2586_v19, %v3193_v61 }
 0x1c9   :  { %2222 = vmatprep.subr.bf16.mxu1 %v2959_v23 }
 0x1cc   :  { %2223 = vmatpush1.bf16.msra.mxu1 %v2957_v24 }
 0x1cd   :  { %2224 = vmatprep.subr.bf16.mxu1 %v2962_v60 }
 0x1d0   :  { %2225 = vmatpush1.bf16.msra.mxu1 %v2960_v25 }
 0x1d3   :  { %2227 = vmatmul.mubr.bf16.vlgmr.msra.gmra.mrb[24].mxu1 %v638_v14 }
 0x206   :  { %v2604_v26 = vpop.f32.mrb[16].mxu1 }
 0x207   :  { %v2605_v27 = vpop.f32.mrb[17].mxu1 }
 0x208   :  { %v2606_v16 = vadd.f32 %v2605_v27, %v2604_v26  ;;  %v2607_v28 = vpop.f32.mrb[18].mxu1  ;;  %v2332_v27 = vrot.slane %v2586_v19, %v3218_v6  ;;  %v2587_v6 = vld [vmem:[%s3281_s8 + $0x1] ss:$0 sm:$0xff] }
 0x209   :  { %v2608_v29 = vpop.f32.mrb[19].mxu1 }
 0x20a   :  { %v1414_v34 = vadd.f32 %v2606_v16, %v781_v31 }
 0x226   :  { %v2626_v32 = vpop.f32.mrb[20].mxu1 }
 0x227   :  { %v2627_v33 = vpop.f32.mrb[21].mxu1 }
 0x228   :  { %v2628_v35 = vadd.f32 %v2627_v33, %v2626_v32  ;;  %v2629_v36 = vpop.f32.mrb[22].mxu1 }
 0x229   :  { %v2630_v37 = vpop.f32.mrb[23].mxu1 }
 0x22a   :  { %v1454_v38 = vadd.f32 %v2628_v35, %v1414_v34 }
 0x22c   :  { %v1461_v50 = vmax.f32 %v1454_v38, 0.0 }
 0x22e   :  { %v1481_v57 = vmul.f32 %v1475_v52, %v1461_v50 }
 0x246   :  { %v1372_v42 = vpop.f32.mrb[16].mxu0 }
 0x247   :  { %v2676_v43 = vadd.f32 %v1372_v42, %v773_v39  ;;  %v1374_v55 = vpop.f32.mrb[17].mxu0 }
 0x248   :  { %v2677_v45 = vadd.f32 %v1374_v55, %v777_v41  ;;  %v1376_v47 = vpop.f32.mrb[18].mxu0 }
 0x249   :  { %v1459_v48 = vmax.f32 %v2676_v43, 0.0  ;;  %v1377_v49 = vpop.f32.mrb[19].mxu0 }
 0x24a   :  { %v1460_v51 = vmax.f32 %v2677_v45, 0.0 }
 0x24b   :  { %v1479_v54 = vmul.f32 %v1467_v44, %v1459_v48 }
 0x24c   :  { %v1480_v56 = vmul.f32 %v1471_v46, %v1460_v51 }
 0x24e   :  { %v1482_v59 = vadd.f32 %v1480_v56, %v1479_v54 }
 0x250   :  { %v1483_v63 = vadd.f32 %v1482_v59, %v1481_v57 }
 0x252   :  { %1484 = vadd.xlane.f32.xlu0 %v1483_v63 }
 0x266   :  { %v2648_v0 = vpop.f32.mrb[20].mxu0 }
 0x267   :  { %v2649_v62 = vpop.f32.mrb[21].mxu0 }
 0x268   :  { %v2650_v1 = vadd.f32 %v2649_v62, %v2648_v0  ;;  %v2651_v2 = vpop.f32.mrb[22].mxu0 }
 0x269   :  { %v2652_v5 = vpop.f32.mrb[23].mxu0 }
 0x26a   :  { %v2270_v10 = vadd.f32 %v2650_v1, %v1637_v7 }
 0x287   :  { %v2670_v8 = vpop.f32.mrb[24].mxu0 }
 0x288   :  { %v2671_v9 = vpop.f32.mrb[25].mxu0 }
 0x289   :  { %v2672_v11 = vadd.f32 %v2671_v9, %v2670_v8  ;;  %v2673_v12 = vpop.f32.mrb[26].mxu0 }
 0x28a   :  { %v2674_v13 = vpop.f32.mrb[27].mxu0 }
 0x28b   :  { %v2310_v14 = vadd.f32 %v2672_v11, %v2270_v10 }
 0x28d   :  { %v2317_v25 = vmax.f32 %v2310_v14, 0.0 }
 0x28f   :  { %v2338_v29 = vmul.f32 %v2332_v27, %v2317_v25 }
 0x2a6   :  { %v2228_v18 = vpop.f32.mrb[24].mxu1 }
 0x2a7   :  { %v2678_v4 = vadd.f32 %v2228_v18, %v1629_v15  ;;  %v2230_v20 = vpop.f32.mrb[25].mxu1 }
 0x2a8   :  { %v2679_v21 = vadd.f32 %v2230_v20, %v1633_v17  ;;  %v2232_v23 = vpop.f32.mrb[26].mxu1 }
 0x2a9   :  { %v2315_v24 = vmax.f32 %v2678_v4, 0.0  ;;  %v2233_v60 = vpop.f32.mrb[27].mxu1 }
 0x2aa   :  { %v2316_v26 = vmax.f32 %v2679_v21, 0.0 }
 0x2ab   :  { %v2336_v16 = vmul.f32 %v2324_v53, %v2315_v24 }
 0x2ac   :  { %v2337_v28 = vmul.f32 %v2328_v22, %v2316_v26 }
 0x2ae   :  { %v2339_v30 = vadd.f32 %v2337_v28, %v2336_v16 }
 0x2b0   :  { %v2340_v31 = vadd.f32 %v2339_v30, %v2338_v29 }
 0x2b2   :  { %2341 = vadd.xlane.f32.xlu0 %v2340_v31 }
 0x2df   :  { %v1485_v32 = vpop.xlane.xlu0 %1484 }
 0x2e0   :  { %v1491_v61 = vadd.f32 %v2488_v58, %v1485_v32 }
 0x2e2   :  { %1493 = vst.msk [vmem:[%s3282_s9] sm:$0xff] %vm1492_vm4, %v1491_v61 }
 0x33f   :  { %v2342_v33 = vpop.xlane.xlu0 %2341 }
 0x340   :  { %v2348_v34 = vadd.f32 %v2587_v6, %v2342_v33 }
 0x342   :  { %2349 = vst.msk [vmem:[%s3283_s10] sm:$0xff] %vm1492_vm4, %v2348_v34 }
 0x343   :  { %2358 = vsyncpa [#allocation3], 1 }
 0x344   :  { %2359 = vsyncpa [#allocation5], 1 }

</bundles_post_ra>
